<compile_context>
chip_gen: v7x
topology: tpu7x:2x2x1
jax: 0.10.0
libtpu: 0.0.40
codegen_flags: <defaults>
</compile_context>

<pallas_src>
import functools

import jax
import jax.numpy as jnp
from jax.experimental import pallas as pl
from jax.experimental.pallas import tpu as pltpu


def ffnn_kernel(x_ref, w1_ref, b1_ref, w2_ref, b2_ref, o_ref, *, matmul_dtype):
    # hidden = ReLU(x @ W1 + b1)   (MXU inputs in matmul_dtype, f32 accum)
    x = x_ref[...].astype(matmul_dtype)                       # (B, D)
    w1 = w1_ref[...].astype(matmul_dtype)                     # (D, H)
    h = jnp.dot(x, w1, preferred_element_type=jnp.float32)    # (B, H) f32
    h = jnp.maximum(h + b1_ref[...], 0.0)                     # bias bcast (1, H)

    # logits = hidden @ W2_pad + b2_pad   (padded lanes -> -1e30 logits)
    w2 = w2_ref[...].astype(matmul_dtype)                     # (H, 128)
    logits = jnp.dot(h.astype(matmul_dtype), w2,
                     preferred_element_type=jnp.float32)      # (B, 128) f32
    logits = logits + b2_ref[...]                             # bias bcast (1, 128)

    # log_softmax over the lane (feature) axis, numerically stable, f32.
    # Padded lanes hold -1e30: they never win the max and exp() underflows
    # to exactly 0, so the denominator matches the unpadded softmax.
    m = jnp.max(logits, axis=-1, keepdims=True)
    shifted = logits - m
    lse = jnp.log(jnp.sum(jnp.exp(shifted), axis=-1, keepdims=True))
    o_ref[...] = (shifted - lse).astype(o_ref.dtype)


def ffnn_forward(x, w1, b1, w2, b2, *, batch_tile=512,
                 matmul_dtype=jnp.bfloat16):
    """x: (B, D); w1: (D, H); b1: (H,); w2: (H, O); b2: (O,) -> (B, O) f32 log-probs.

    matmul_dtype: dtype of MXU inputs (bf16 recommended on v6e/v7x; use
    jnp.float32 for exact parity with the f32 PyTorch module). Accumulation
    and all post-matmul math are always f32.
    """
    B, D = x.shape
    H = w1.shape[1]
    O = w2.shape[1]
    O_pad = max(128, pl.cdiv(O, 128) * 128)   # lane-dense output width

    b1_2d = b1.reshape(1, H)
    # Pad W2 columns with zeros and b2 with a large finite negative so padded
    # logits are ~-1e30 (never the max, exp underflows to 0). In a real
    # deployment these would be pre-padded once, not per call.
    w2_p = jnp.zeros((H, O_pad), w2.dtype).at[:, :O].set(w2)
    b2_p = jnp.full((1, O_pad), -1e30, jnp.float32).at[:, :O].set(
        b2.astype(jnp.float32))

    kernel = functools.partial(ffnn_kernel, matmul_dtype=matmul_dtype)
    out_shape = jax.ShapeDtypeStruct((B, O_pad), jnp.float32)

    if B <= batch_tile:
        # Tiny problem: single invocation, no grid / pipeline machinery —
        # every operand is one full-array VMEM block.
        vmem = pl.BlockSpec(memory_space=pltpu.MemorySpace.VMEM)
        out = pl.pallas_call(
            kernel,
            out_shape=out_shape,
            in_specs=[vmem, vmem, vmem, vmem, vmem],
            out_specs=vmem,
        )(x, w1, b1_2d, w2_p, b2_p)
    else:
        # Larger batch: tile ONLY the batch axis. Weights/biases use a
        # constant index_map -> DMA'd once and VMEM-resident across the grid.
        # Batch tiles are independent -> "parallel" (megacore sharding on v7x).
        # TODO(synk): at large D/H, tile the D (reduction) axis with an f32
        # accumulator + pl.when init/finalize, single-buffer the weight blocks
        # (pipeline_mode=pl.Buffered(1)), and/or raise vmem_limit_bytes for
        # v7x's smaller (64 MiB phys / 32 MiB scoped) VMEM.
        out = pl.pallas_call(
            kernel,
            out_shape=out_shape,
            grid=(pl.cdiv(B, batch_tile),),
            in_specs=[
                pl.BlockSpec((batch_tile, D), lambda i: (i, 0)),
                pl.BlockSpec((D, H), lambda i: (0, 0)),
                pl.BlockSpec((1, H), lambda i: (0, 0)),
                pl.BlockSpec((H, O_pad), lambda i: (0, 0)),
                pl.BlockSpec((1, O_pad), lambda i: (0, 0)),
            ],
            out_specs=pl.BlockSpec((batch_tile, O_pad), lambda i: (i, 0)),
            compiler_params=pltpu.CompilerParams(
                dimension_semantics=("parallel",)),
        )(x, w1, b1_2d, w2_p, b2_p)

    # Drop the padded lanes (wrapper-side slice of the lane-dense slab).
    return out[:, :O]


def init_params(key, input_dim, h, output_dim=5):
    """Deterministic init mimicking nn.Linear default (uniform +/- 1/sqrt(fan_in))."""
    k1, k2, k3, k4 = jax.random.split(key, 4)
    bound1 = 1.0 / jnp.sqrt(input_dim)
    bound2 = 1.0 / jnp.sqrt(h)
    w1 = jax.random.uniform(k1, (input_dim, h), jnp.float32, -bound1, bound1)
    b1 = jax.random.uniform(k2, (h,), jnp.float32, -bound1, bound1)
    w2 = jax.random.uniform(k3, (h, output_dim), jnp.float32, -bound2, bound2)
    b2 = jax.random.uniform(k4, (output_dim,), jnp.float32, -bound2, bound2)
    return w1, b1, w2, b2


def _reference(x, w1, b1, w2, b2, matmul_dtype=jnp.float32):
    """Pure-JAX reference mirroring the kernel's matmul-input dtype."""
    h = jnp.dot(x.astype(matmul_dtype), w1.astype(matmul_dtype),
                preferred_element_type=jnp.float32) + b1
    h = jnp.maximum(h, 0.0)
    logits = jnp.dot(h.astype(matmul_dtype), w2.astype(matmul_dtype),
                     preferred_element_type=jnp.float32) + b2
    return jax.nn.log_softmax(logits, axis=1)


if __name__ == "__main__":
    key = jax.random.PRNGKey(0)
    kx, kp, kx2 = jax.random.split(key, 3)

    batch, input_dim, h = 8, 32, 32   # output_dim fixed at 5 by the module
    w1, b1, w2, b2 = init_params(kp, input_dim, h)

    # --- small-batch path, f32 matmuls: exact semantics of the PyTorch module
    x = jax.random.normal(kx, (batch, input_dim), jnp.float32)
    out = jax.block_until_ready(
        ffnn_forward(x, w1, b1, w2, b2, matmul_dtype=jnp.float32))
    ref = _reference(x, w1, b1, w2, b2, jnp.float32)
    assert out.shape == (batch, 5)
    assert bool(jnp.all(jnp.isfinite(out)))
    assert jnp.allclose(out, ref, atol=1e-5, rtol=1e-5)

    # --- batch-tiled path: 2 parallel batch tiles (even -> both v7x TCs),
    # --- lane-dense (B,128) stores, bf16 MXU inputs / f32 accumulation.
    big_batch = 1024
    x2 = jax.random.normal(kx2, (big_batch, input_dim), jnp.float32)
    out2 = jax.block_until_ready(
        ffnn_forward(x2, w1, b1, w2, b2, batch_tile=512))
    assert out2.shape == (big_batch, 5)
    assert bool(jnp.all(jnp.isfinite(out2)))
    # tight check vs a reference with matching bf16 matmul inputs
    ref2_bf16 = _reference(x2, w1, b1, w2, b2, jnp.bfloat16)
    assert jnp.allclose(out2, ref2_bf16, atol=1e-3, rtol=1e-3)
    # loose semantic check vs the pure-f32 module
    ref2_f32 = _reference(x2, w1, b1, w2, b2, jnp.float32)
    assert jnp.allclose(out2, ref2_f32, atol=5e-2, rtol=5e-2)

    print("KERNEL_OK")
</pallas_src>

<mosaic_0001>
module attributes {stable_mosaic.version = 11 : i64} {
  func.func @ffnn_kernel(%arg0: memref<8x32xf32, #tpu.memory_space<vmem>>, %arg1: memref<32x32xf32, #tpu.memory_space<vmem>>, %arg2: memref<1x32xf32, #tpu.memory_space<vmem>>, %arg3: memref<32x128xf32, #tpu.memory_space<vmem>>, %arg4: memref<1x128xf32, #tpu.memory_space<vmem>>, %arg5: memref<8x128xf32, #tpu.memory_space<vmem>>) attributes {dimension_semantics = [], scalar_prefetch = 0 : i64, scratch_operands = 0 : i64, tpu.core_type = #tpu.core_type<tc>} {
    %c0 = arith.constant 0 : index
    %c0_0 = arith.constant 0 : index
    %0 = vector.load %arg0[%c0, %c0_0] : memref<8x32xf32, #tpu.memory_space<vmem>>, vector<8x32xf32>
    %c0_1 = arith.constant 0 : index
    %c0_2 = arith.constant 0 : index
    %1 = vector.load %arg1[%c0_1, %c0_2] : memref<32x32xf32, #tpu.memory_space<vmem>>, vector<32x32xf32>
    %cst = arith.constant dense<0.000000e+00> : vector<8x32xf32>
    %2 = tpu.matmul %0, %1, %cst {dimension_numbers = #tpu.dot_dimension_numbers<[1], [0], [0], [1], [0, 0, 1, 1], [], []>} : vector<8x32xf32>, vector<32x32xf32>, vector<8x32xf32> -> vector<8x32xf32>
    %c0_3 = arith.constant 0 : index
    %c0_4 = arith.constant 0 : index
    %3 = vector.load %arg2[%c0_3, %c0_4] : memref<1x32xf32, #tpu.memory_space<vmem>>, vector<1x32xf32>
    %4 = vector.broadcast %3 : vector<1x32xf32> to vector<8x32xf32>
    %5 = arith.addf %2, %4 : vector<8x32xf32>
    %cst_5 = arith.constant 0.000000e+00 : f32
    %6 = vector.broadcast %cst_5 : f32 to vector<8x32xf32>
    %7 = arith.maximumf %5, %6 : vector<8x32xf32>
    %c0_6 = arith.constant 0 : index
    %c0_7 = arith.constant 0 : index
    %8 = vector.load %arg3[%c0_6, %c0_7] : memref<32x128xf32, #tpu.memory_space<vmem>>, vector<32x128xf32>
    %cst_8 = arith.constant dense<0.000000e+00> : vector<8x128xf32>
    %9 = tpu.matmul %7, %8, %cst_8 {dimension_numbers = #tpu.dot_dimension_numbers<[1], [0], [0], [1], [0, 0, 1, 1], [], []>} : vector<8x32xf32>, vector<32x128xf32>, vector<8x128xf32> -> vector<8x128xf32>
    %c0_9 = arith.constant 0 : index
    %c0_10 = arith.constant 0 : index
    %10 = vector.load %arg4[%c0_9, %c0_10] : memref<1x128xf32, #tpu.memory_space<vmem>>, vector<1x128xf32>
    %11 = vector.broadcast %10 : vector<1x128xf32> to vector<8x128xf32>
    %12 = arith.addf %9, %11 : vector<8x128xf32>
    %cst_11 = arith.constant dense<0xFF800000> : vector<8xf32>
    %13 = vector.multi_reduction <maximumf>, %12, %cst_11 [1] : vector<8x128xf32> to vector<8xf32>
    %14 = vector.shape_cast %13 : vector<8xf32> to vector<8x1xf32>
    %15 = vector.broadcast %14 : vector<8x1xf32> to vector<8x128xf32>
    %16 = arith.subf %12, %15 : vector<8x128xf32>
    %17 = math.exp %16 : vector<8x128xf32>
    %cst_12 = arith.constant dense<0.000000e+00> : vector<8xf32>
    %18 = vector.multi_reduction <add>, %17, %cst_12 [1] : vector<8x128xf32> to vector<8xf32>
    %19 = vector.shape_cast %18 : vector<8xf32> to vector<8x1xf32>
    %20 = math.log %19 : vector<8x1xf32>
    %21 = vector.broadcast %20 : vector<8x1xf32> to vector<8x128xf32>
    %22 = arith.subf %16, %21 : vector<8x128xf32>
    %c0_13 = arith.constant 0 : index
    %c0_14 = arith.constant 0 : index
    %23 = vector.load %arg5[%c0_13, %c0_14] : memref<8x128xf32, #tpu.memory_space<vmem>>, vector<8x128xf32>
    tpu.vector_store %arg5[%c0_13, %c0_14], %22 {strides = array<i32>} : memref<8x128xf32, #tpu.memory_space<vmem>>, vector<8x128xf32>,
    return
  }
}

</mosaic_0001>

<bundles_post_ra>
// kernel: tpu_custom_call.1
= control target key start
LH: loop header
LB: loop body
LE: loop exit
PB: predicated region body
PF: predicated region fallthrough
CT: control target
= control target key end

     0   :  { %10 = vsyncpa [#allocation3], 0  ;;  %s512_s0 = inlined_call_operand.hbm [shape: f32[8,32], index: 0, kind: input, shape index: {}]   ;;  %s513_s1 = inlined_call_operand.hbm [shape: f32[32,32], index: 1, kind: input, shape index: {}]   ;;  %s514_s2 = inlined_call_operand.vmem [shape: f32[1,32], index: 2, kind: input, shape index: {}]   ;;  %s515_s3 = inlined_call_operand.hbm [shape: f32[32,128], index: 3, kind: input, shape index: {}]   ;;  %s516_s4 = inlined_call_operand.vmem [shape: f32[1,128], index: 4, kind: input, shape index: {}]   ;;  %s517_s5 = inlined_call_operand.hbm [shape: f32[8,128], index: 5, kind: output, shape index: {}]  }
   0x1   :  { %11 = vsyncpa [#allocation6], 0 }
   0x2   :  { %12 = vsyncpa [#allocation4], 0  ;;  %s413_s18 = smov [#allocation5]   ;;  %s319_s22 = scalar_lea.hbm %s513_s1, 512 }
   0x3   :  { %s28_s19 = sshll.u32 %s413_s18, 4  ;;  %p320_p0 = scmp.ne.s32.totalorder %s513_s1, %s319_s22  ;;  %s29_s19 = int_to_ptr.vmem [resolvable:$true] %s28_s19 }
   0x4   :  { %p323_p1 = scmp.lt.u32.totalorder %s319_s22, %s513_s1 }
   0x6   :  { %p325_p2 = pnand %p323_p1, %p320_p0 }
   0x8   :  { %328 = shalt.err (!%p325_p2)
}
   0x9   :  { %s329_s27 = scalar_lea.vmem %s29_s19, 512  ;;  %p334_p4 = scmp.lt.s32.totalorder %s29_s19, %s29_s19 }
   0xa   :  { %p330_p3 = scmp.ne.s32.totalorder %s29_s19, %s329_s27  ;;  %p335_p5 = scmp.lt.s32.totalorder %s329_s27, %s329_s27 }
   0xc   :  { %p336_p6 = por %p335_p5, %p334_p4 }
   0xe   :  { %p337_p7 = pnand %p336_p6, %p330_p3 }
  0x10   :  { %340 = shalt.err (!%p337_p7)
}
  0x11   :  { %s414_s28 = smov 128   ;;  %s415_s29 = smov 8  }
  0x12   :  { %34 = dma.hbm_to_vmem [thread:$0]  %s513_s1, 512, %s29_s19, [#allocation6], %s414_s28, %s414_s28, %s415_s29  }
  0x13   :  { %s416_s7 = smov [#allocation2]   ;;  %s417_s9 = smov [#allocation7]  }
  0x14   :  { %s19_s8 = sshll.u32 %s416_s7, 4  ;;  %s42_s10 = sshll.u32 %s417_s9, 4  ;;  %s20_s8 = int_to_ptr.vmem [resolvable:$true] %s19_s8  ;;  %s43_s10 = int_to_ptr.vmem [resolvable:$true] %s42_s10 }
  0x15   :  { %s341_s13 = scalar_lea.hbm %s512_s0, 128 }
  0x16   :  { %p342_p8 = scmp.ne.s32.totalorder %s512_s0, %s341_s13  ;;  %p345_p9 = scmp.lt.u32.totalorder %s341_s13, %s512_s0 }
  0x18   :  { %p347_p10 = pnand %p345_p9, %p342_p8 }
  0x1a   :  { %350 = shalt.err (!%p347_p10)
}
  0x1b   :  { %s351_s1 = scalar_lea.vmem %s20_s8, 128  ;;  %p356_p12 = scmp.lt.s32.totalorder %s20_s8, %s20_s8 }
  0x1c   :  { %p352_p11 = scmp.ne.s32.totalorder %s20_s8, %s351_s1  ;;  %p357_p13 = scmp.lt.s32.totalorder %s351_s1, %s351_s1 }
  0x1e   :  { %p358_p0 = por %p357_p13, %p356_p12 }
  0x20   :  { %p359_p1 = pnand %p358_p0, %p352_p11 }
  0x22   :  { %362 = shalt.err (!%p359_p1)
}
  0x23   :  { %22 = dma.hbm_to_vmem [thread:$0]  %s512_s0, 128, %s20_s8, [#allocation3]  }
  0x24   :  { %s363_s22 = scalar_lea.hbm %s515_s3, 512 }
  0x25   :  { %p364_p2 = scmp.ne.s32.totalorder %s515_s3, %s363_s22  ;;  %p367_p3 = scmp.lt.u32.totalorder %s363_s22, %s515_s3 }
  0x27   :  { %p369_p4 = pnand %p367_p3, %p364_p2 }
  0x29   :  { %372 = shalt.err (!%p369_p4)
}
  0x2a   :  { %s373_s27 = scalar_lea.vmem %s43_s10, 512  ;;  %p378_p6 = scmp.lt.s32.totalorder %s43_s10, %s43_s10 }
  0x2b   :  { %p374_p5 = scmp.ne.s32.totalorder %s43_s10, %s373_s27  ;;  %p379_p7 = scmp.lt.s32.totalorder %s373_s27, %s373_s27 }
  0x2d   :  { %p380_p8 = por %p379_p7, %p378_p6 }
  0x2f   :  { %p381_p9 = pnand %p380_p8, %p374_p5 }
  0x31   :  { %384 = shalt.err (!%p381_p9)
}
  0x32   :  { %48 = dma.hbm_to_vmem [thread:$0]  %s515_s3, 512, %s43_s10, [#allocation6], %s414_s28, %s414_s28, %s415_s29  }
  0x33   :  { %407 = dma.done.wait [#allocation3], 128  }
  0x34   :  { %408 = vsyncadd [#allocation3], 4294967168 }
  0x35   :  { %409 = dma.done.wait [#allocation6], 1024  }
  0x36   :  { %410 = vsyncadd [#allocation6], 4294966272  ;;  %v418_v0 = vmov 0.0|0.0   ;;  %vm419_vm0 = vmmov 0   ;;  %v420_v1 = vmov 0.0   ;;  %v61_v2 = vld [vmem:[#allocation5] sm:$0xff] }
  0x37   :  { %294 = vmatprep.subr.bf16.mxu0 %v418_v0  ;;  %280 = vmatprep.mubr.msk.f32.mxu0 %vm419_vm0, %v420_v1  ;;  %v62_v3 = vld [vmem:[#allocation5 + $0x8] sm:$0xff]  ;;  %v63_v4 = vld [vmem:[#allocation5 + $0x10] sm:$0xff]  ;;  %v64_v6 = vld [vmem:[#allocation5 + $0x18] sm:$0xff]  ;;  %vm72_vm1 = vcmask 261120  }
  0x38   :  { %300 = vmatprep.subr.bf16.mxu1 %v418_v0  ;;  %291 = vmatprep.mubr.msk.f32.mxu1 %vm419_vm0, %v420_v1  ;;  %v295_v5 = vpack.c.bf16 %v62_v3, %v61_v2  ;;  %v147_v7 = vld [vmem:[#allocation7] sm:$0xff]  ;;  %v148_v8 = vld [vmem:[#allocation7 + $0x8] sm:$0xff]  ;;  %v298_v9 = vpack.c.bf16 %v64_v6, %v63_v4  ;;  %v60_v11 = vld [vmem:[#allocation2] sm:$0xff] }
  0x39   :  { %v301_v10 = vpack.c.bf16 %v148_v8, %v147_v7  ;;  %v149_v12 = vld [vmem:[#allocation7 + $0x10] sm:$0xff]  ;;  %v150_v13 = vld [vmem:[#allocation7 + $0x18] sm:$0xff] }
  0x3a   :  { %296 = vmatpush3.bf16.msra.mxu0 %v295_v5  ;;  %v304_v14 = vpack.c.bf16 %v150_v13, %v149_v12  ;;  %v258_v15 = vld [vmem:[%s514_s2] ss:$0 sm:$0xff]  ;;  %s421_s2 = smov [#allocation8]  }
  0x3b   :  { %297 = vmatprep.subr.bf16.mxu0 %v418_v0  ;;  %302 = vmatpush3.bf16.msra.mxu1 %v301_v10  ;;  %v260_v20 = vld [vmem:[%s516_s4] ss:$0 sm:$0xff]  ;;  %s248_s7 = sshll.u32 %s421_s2, 4  ;;  %s249_s7 = int_to_ptr.vmem [resolvable:$true] %s248_s7 }
  0x3c   :  { %303 = vmatprep.subr.bf16.mxu1 %v418_v0  ;;  %s385_s4 = scalar_lea.vmem %s249_s7, 128  ;;  %p390_p11 = scmp.lt.s32.totalorder %s249_s7, %s249_s7 }
  0x3d   :  { %p386_p10 = scmp.ne.s32.totalorder %s249_s7, %s385_s4  ;;  %p391_p12 = scmp.lt.s32.totalorder %s385_s4, %s385_s4 }
  0x3e   :  { %299 = vmatpush3.bf16.msra.mxu0 %v298_v9 }
  0x3f   :  { %305 = vmatpush3.bf16.msra.mxu1 %v304_v14  ;;  %p392_p13 = por %p391_p12, %p390_p11 }
  0x41   :  { %281 = vmatmul.mubr.msk.f32.vlgmr.msra.gmra.mrb[0].mxu0 %vm72_vm1, %v60_v11  ;;  %p393_p0 = pnand %p392_p13, %p386_p10 }
 0x114   :  { %v142_v16 = vpop.f32.mrb[0].mxu0 }
 0x115   :  { %v143_v17 = vadd.f32 %v258_v15, %v142_v16  ;;  %v282_v18 = vpop.f32.mrb[1].mxu0 }
 0x117   :  { %v146_v19 = vmax.f32 %v143_v17, 0.0 }
 0x119   :  { %292 = vmatmul.mubr.msk.f32.vlgmr.msra.gmra.mrb[0].mxu1 %vm72_vm1, %v146_v19 }
 0x1ec   :  { %v227_v21 = vpop.f32.mrb[0].mxu1 }
 0x1ed   :  { %v228_v22 = vadd.f32 %v260_v20, %v227_v21  ;;  %v293_v23 = vpop.f32.mrb[1].mxu1 }
 0x1ef   :  { %231 = vmax.xlane.f32.xlu0 %v228_v22 }
 0x27c   :  { %v232_v24 = vpop.xlane.xlu0 %231 }
 0x27d   :  { %v233_v25 = vsub.f32 %v228_v22, %v232_v24 }
 0x27f   :  { %v234_v26 = vmul.f32 1.442695, %v233_v25 }
 0x281   :  { %315 = vpow2.f32 %v234_v26 }
 0x28b   :  { %v316_v27 = vpop.eup %315 }
 0x28c   :  { %236 = vadd.xlane.f32.xlu0 %v316_v27 }
 0x319   :  { %v237_v28 = vpop.xlane.xlu0 %236 }
 0x31a   :  { %317 = vlog2.f32 %v237_v28 }
 0x324   :  { %v318_v29 = vpop.eup %317 }
 0x325   :  { %v239_v30 = vmul.f32 0.6931472, %v318_v29 }
 0x327   :  { %v240_v31 = vsub.f32 %v233_v25, %v239_v30 }
 0x329   :  { %241 = vst [vmem:[#allocation8] sm:$0xff] %v240_v31 }
 0x32a   :  { %396 = shalt.err (!%p393_p0)
}
 0x32b   :  { %s397_s10 = scalar_lea.hbm %s517_s5, 128 }
 0x32c   :  { %p398_p1 = scmp.ne.s32.totalorder %s517_s5, %s397_s10  ;;  %p401_p2 = scmp.lt.u32.totalorder %s397_s10, %s517_s5 }
 0x32e   :  { %p403_p3 = pnand %p401_p2, %p398_p1 }
 0x330   :  { %406 = shalt.err (!%p403_p3)
}
 0x331   :  { %251 = dma.vmem_to_hbm [thread:$0]  %s249_s7, 128, %s517_s5, [#allocation4]  }
 0x332   :  { %411 = dma.done.wait [#allocation4], 128  }
 0x333   :  { %412 = vsyncadd [#allocation4], 4294967168 }
 0x334   :  { %255 = vsyncpa [#allocation3], 1 }
 0x335   :  { %256 = vsyncpa [#allocation6], 1 }
 0x336   :  { %257 = vsyncpa [#allocation4], 1 }

</bundles_post_ra>
